<compile_context>
chip_gen: v6e
topology: v6e:2x2x1
jax: 0.10.0
libtpu: 0.0.40
codegen_flags: <defaults>
</compile_context>

<pallas_src>
import jax
import jax.numpy as jnp
from jax import lax
from jax.experimental import pallas as pl
from jax.experimental.pallas import tpu as pltpu

FC1, FC2, FC3 = 256, 256, 128
N_HEAD = 2  # row 0 = mu head, row 1 = var head


def _round_up(x, m):
    return ((x + m - 1) // m) * m


# ----------------------------------------------------------------------------
# Kernel: fused 3-layer MLP base + transposed [2, fc3] head.
# 4 MXU matmuls (bf16 operands, f32 accumulation), one lane-dense (2, tb)
# output write.
# ----------------------------------------------------------------------------
def actor_kernel(x_ref, w1_ref, w2_ref, w3_ref, wht_ref, b_ref, bh_ref, out_ref):
    x = x_ref[...]

    # Static, lane-aligned slices of the packed layer-bias row (f32).
    b1 = b_ref[:, 0:FC1]
    b2 = b_ref[:, FC1:FC1 + FC2]
    b3 = b_ref[:, FC1 + FC2:FC1 + FC2 + FC3]

    # base: Linear -> ReLU (x3), bf16 MXU path with f32 accumulation.
    h = jnp.dot(x.astype(jnp.bfloat16), w1_ref[...],
                preferred_element_type=jnp.float32) + b1
    h = jnp.maximum(h, 0.0)
    h = jnp.dot(h.astype(jnp.bfloat16), w2_ref[...],
                preferred_element_type=jnp.float32) + b2
    h = jnp.maximum(h, 0.0)
    h = jnp.dot(h.astype(jnp.bfloat16), w3_ref[...],
                preferred_element_type=jnp.float32) + b3
    h = jnp.maximum(h, 0.0)

    # Transposed fused head: (2, fc3) @ (fc3, tb) -> (2, tb), lane-dense.
    zt = jnp.dot(wht_ref[...], h.astype(jnp.bfloat16).T,
                 preferred_element_type=jnp.float32)

    b_mu = bh_ref[0]   # scalar reads from SMEM
    b_var = bh_ref[1]

    mu = jnp.tanh(zt + b_mu)                                           # EUP
    v = zt + b_var
    # Softplus (beta=1, threshold=20, PyTorch default), exp arg clamped.
    sp = jnp.where(v > 20.0, v, jnp.log1p(jnp.exp(jnp.minimum(v, 20.0))))

    row = lax.broadcasted_iota(jnp.int32, zt.shape, dimension=0)
    out_ref[...] = jnp.where(row == 0, mu, sp)


def actor_forward(state, params):
    """state: [B, D_in] float32. Returns (mu, var), squeezed like torch.squeeze."""
    B, d_in = state.shape
    w1, w2, w3 = params["w1"], params["w2"], params["w3"]
    wht = params["w_head_t"]
    b_packed = params["b_packed"]
    b_head = params["b_head"]

    # Batch tiling (see header). Lane-dense (2, tb) output block requires
    # tb % 128 == 0 or tb == B.
    if B >= 256:
        tb = min(1024, _round_up(pl.cdiv(B, 2), 128))
    else:
        tb = B
    grid = (pl.cdiv(B, tb),)

    def full_spec(shape):
        return pl.BlockSpec(shape, lambda i: (0, 0))

    out = pl.pallas_call(
        actor_kernel,
        out_shape=jax.ShapeDtypeStruct((N_HEAD, B), jnp.float32),
        grid=grid,
        in_specs=[
            pl.BlockSpec((tb, d_in), lambda i: (i, 0)),   # state, tiled on batch
            full_spec(w1.shape),                          # weights: resident blocks
            full_spec(w2.shape),
            full_spec(w3.shape),
            full_spec(wht.shape),
            full_spec(b_packed.shape),                    # packed layer biases
            pl.BlockSpec(memory_space=pltpu.MemorySpace.SMEM),  # (2,) head biases
        ],
        out_specs=pl.BlockSpec((N_HEAD, tb), lambda i: (0, i)),
        compiler_params=pltpu.CompilerParams(
            dimension_semantics=("parallel",)),
    )(state, w1, w2, w3, wht, b_packed, b_head)

    # torch.squeeze removes all size-1 dims; out[0]/out[1] are contiguous rows.
    return jnp.squeeze(out[0]), jnp.squeeze(out[1])


# ----------------------------------------------------------------------------
# Deterministic parameter init (nn.Linear's U(-1/sqrt(fan_in), +...) law,
# seeded with PRNGKey(0) — synthetic weights, not a checkpoint load).
# ----------------------------------------------------------------------------
def init_params(key, input_dim, fc1=FC1, fc2=FC2, fc3=FC3):
    def linear(key, fan_in, fan_out):
        kw, kb = jax.random.split(key)
        bound = 1.0 / jnp.sqrt(jnp.float32(fan_in))
        w = jax.random.uniform(kw, (fan_in, fan_out), jnp.float32, -bound, bound)
        b = jax.random.uniform(kb, (fan_out,), jnp.float32, -bound, bound)
        return w, b

    k1, k2, k3, k4, k5 = jax.random.split(key, 5)
    w1, b1 = linear(k1, input_dim, fc1)
    w2, b2 = linear(k2, fc1, fc2)
    w3, b3 = linear(k3, fc2, fc3)
    w_mu, b_mu = linear(k4, fc3, 1)
    w_var, b_var = linear(k5, fc3, 1)

    w_head_t = jnp.concatenate([w_mu, w_var], axis=1).T           # [2, fc3]
    b_packed = jnp.concatenate([b1, b2, b3])[None, :]             # [1, fc1+fc2+fc3]
    b_head = jnp.concatenate([b_mu, b_var])                       # [2]

    return dict(
        w1=w1.astype(jnp.bfloat16),
        w2=w2.astype(jnp.bfloat16),
        w3=w3.astype(jnp.bfloat16),
        w_head_t=w_head_t.astype(jnp.bfloat16),
        b_packed=b_packed.astype(jnp.float32),
        b_head=b_head.astype(jnp.float32),
    )


# Pure-JAX reference mirroring the kernel math (bf16 operands, f32 accum).
def actor_reference(state, params):
    def dot(a, w):
        return jnp.dot(a.astype(jnp.bfloat16), w,
                       preferred_element_type=jnp.float32)

    b = params["b_packed"]
    b1 = b[:, 0:FC1]
    b2 = b[:, FC1:FC1 + FC2]
    b3 = b[:, FC1 + FC2:FC1 + FC2 + FC3]

    h = jnp.maximum(dot(state, params["w1"]) + b1, 0.0)
    h = jnp.maximum(dot(h, params["w2"]) + b2, 0.0)
    h = jnp.maximum(dot(h, params["w3"]) + b3, 0.0)
    z = dot(h, params["w_head_t"].T) + params["b_head"][None, :]   # (B, 2)
    mu = jnp.tanh(z[:, 0])
    v = z[:, 1]
    var = jnp.where(v > 20.0, v, jnp.log1p(jnp.exp(jnp.minimum(v, 20.0))))
    return jnp.squeeze(mu), jnp.squeeze(var)


if __name__ == "__main__":
    key = jax.random.PRNGKey(0)
    k_params, k_state1, k_state2 = jax.random.split(key, 3)

    D_IN = 16  # input_dims=(16,)
    params = init_params(k_params, D_IN)
    fwd = jax.jit(actor_forward)

    # 1) Small per-step RL batch: single full-array block path.
    B1 = 8
    s1 = jax.random.normal(k_state1, (B1, D_IN), jnp.float32)
    mu1, var1 = fwd(s1, params)
    jax.block_until_ready((mu1, var1))
    mu1_ref, var1_ref = actor_reference(s1, params)
    assert mu1.shape == (B1,) and var1.shape == (B1,)
    assert bool(jnp.all(jnp.isfinite(mu1))) and bool(jnp.all(jnp.isfinite(var1)))
    assert bool(jnp.all(var1 >= 0.0)) and bool(jnp.all(jnp.abs(mu1) <= 1.0))
    assert bool(jnp.allclose(mu1, mu1_ref, atol=2e-2, rtol=2e-2))
    assert bool(jnp.allclose(var1, var1_ref, atol=2e-2, rtol=2e-2))

    # 2) Larger, non-divisible batch: exercises cdiv grid, ragged last block
    #    (masked writes) and >=2 parallel grid points (v7x megacore path).
    B2 = 300
    s2 = jax.random.normal(k_state2, (B2, D_IN), jnp.float32)
    mu2, var2 = fwd(s2, params)
    jax.block_until_ready((mu2, var2))
    mu2_ref, var2_ref = actor_reference(s2, params)
    assert mu2.shape == (B2,) and var2.shape == (B2,)
    assert bool(jnp.all(jnp.isfinite(mu2))) and bool(jnp.all(jnp.isfinite(var2)))
    assert bool(jnp.all(var2 >= 0.0)) and bool(jnp.all(jnp.abs(mu2) <= 1.0))
    assert bool(jnp.allclose(mu2, mu2_ref, atol=2e-2, rtol=2e-2))
    assert bool(jnp.allclose(var2, var2_ref, atol=2e-2, rtol=2e-2))

    print("KERNEL_OK")
</pallas_src>

<mosaic_0001>
module attributes {stable_mosaic.version = 11 : i64} {
  func.func @actor_kernel(%arg0: i32, %arg1: memref<8x16xf32, #tpu.memory_space<vmem>>, %arg2: memref<16x256xbf16, #tpu.memory_space<vmem>>, %arg3: memref<256x256xbf16, #tpu.memory_space<vmem>>, %arg4: memref<256x128xbf16, #tpu.memory_space<vmem>>, %arg5: memref<2x128xbf16, #tpu.memory_space<vmem>>, %arg6: memref<1x640xf32, #tpu.memory_space<vmem>>, %arg7: memref<2xf32, #tpu.memory_space<smem>>, %arg8: memref<2x8xf32, #tpu.memory_space<vmem>>) attributes {dimension_semantics = [#tpu.dimension_semantics<parallel>], iteration_bounds = array<i64: 1>, scalar_prefetch = 0 : i64, scratch_operands = 0 : i64, tpu.core_type = #tpu.core_type<tc>, window_params = [{transform_indices = @transform_0, window_bounds = array<i64: 8, 16>}, {pipeline_mode = #tpu.pipeline_mode<synchronous>, transform_indices = @transform_1, window_bounds = array<i64: 16, 256>}, {pipeline_mode = #tpu.pipeline_mode<synchronous>, transform_indices = @transform_2, window_bounds = array<i64: 256, 256>}, {pipeline_mode = #tpu.pipeline_mode<synchronous>, transform_indices = @transform_3, window_bounds = array<i64: 256, 128>}, {pipeline_mode = #tpu.pipeline_mode<synchronous>, transform_indices = @transform_4, window_bounds = array<i64: 2, 128>}, {pipeline_mode = #tpu.pipeline_mode<synchronous>, transform_indices = @transform_5, window_bounds = array<i64: 1, 640>}, {transform_indices = @transform_6, window_bounds = array<i64: 2>}, {transform_indices = @transform_7, window_bounds = array<i64: 2, 8>}]} {
    %c0 = arith.constant 0 : index
    %c0_0 = arith.constant 0 : index
    %0 = vector.load %arg1[%c0, %c0_0] : memref<8x16xf32, #tpu.memory_space<vmem>>, vector<8x16xf32>
    %c0_1 = arith.constant 0 : index
    %c0_2 = arith.constant 0 : index
    %1 = vector.load %arg6[%c0_1, %c0_2] : memref<1x640xf32, #tpu.memory_space<vmem>>, vector<1x256xf32>
    %c0_3 = arith.constant 0 : index
    %c256 = arith.constant 256 : index
    %2 = vector.load %arg6[%c0_3, %c256] : memref<1x640xf32, #tpu.memory_space<vmem>>, vector<1x256xf32>
    %c0_4 = arith.constant 0 : index
    %c512 = arith.constant 512 : index
    %3 = vector.load %arg6[%c0_4, %c512] : memref<1x640xf32, #tpu.memory_space<vmem>>, vector<1x128xf32>
    %4 = arith.truncf %0 : vector<8x16xf32> to vector<8x16xbf16>
    %c0_5 = arith.constant 0 : index
    %c0_6 = arith.constant 0 : index
    %5 = vector.load %arg2[%c0_5, %c0_6] : memref<16x256xbf16, #tpu.memory_space<vmem>>, vector<16x256xbf16>
    %cst = arith.constant dense<0.000000e+00> : vector<8x256xf32>
    %6 = tpu.matmul %4, %5, %cst {dimension_numbers = #tpu.dot_dimension_numbers<[1], [0], [0], [1], [0, 0, 1, 1], [], []>} : vector<8x16xbf16>, vector<16x256xbf16>, vector<8x256xf32> -> vector<8x256xf32>
    %7 = vector.broadcast %1 : vector<1x256xf32> to vector<8x256xf32>
    %8 = arith.addf %6, %7 : vector<8x256xf32>
    %cst_7 = arith.constant 0.000000e+00 : f32
    %9 = vector.broadcast %cst_7 : f32 to vector<8x256xf32>
    %10 = arith.maximumf %8, %9 : vector<8x256xf32>
    %11 = arith.truncf %10 : vector<8x256xf32> to vector<8x256xbf16>
    %c0_8 = arith.constant 0 : index
    %c0_9 = arith.constant 0 : index
    %12 = vector.load %arg3[%c0_8, %c0_9] : memref<256x256xbf16, #tpu.memory_space<vmem>>, vector<256x256xbf16>
    %cst_10 = arith.constant dense<0.000000e+00> : vector<8x256xf32>
    %13 = tpu.matmul %11, %12, %cst_10 {dimension_numbers = #tpu.dot_dimension_numbers<[1], [0], [0], [1], [0, 0, 1, 1], [], []>} : vector<8x256xbf16>, vector<256x256xbf16>, vector<8x256xf32> -> vector<8x256xf32>
    %14 = vector.broadcast %2 : vector<1x256xf32> to vector<8x256xf32>
    %15 = arith.addf %13, %14 : vector<8x256xf32>
    %cst_11 = arith.constant 0.000000e+00 : f32
    %16 = vector.broadcast %cst_11 : f32 to vector<8x256xf32>
    %17 = arith.maximumf %15, %16 : vector<8x256xf32>
    %18 = arith.truncf %17 : vector<8x256xf32> to vector<8x256xbf16>
    %c0_12 = arith.constant 0 : index
    %c0_13 = arith.constant 0 : index
    %19 = vector.load %arg4[%c0_12, %c0_13] : memref<256x128xbf16, #tpu.memory_space<vmem>>, vector<256x128xbf16>
    %cst_14 = arith.constant dense<0.000000e+00> : vector<8x128xf32>
    %20 = tpu.matmul %18, %19, %cst_14 {dimension_numbers = #tpu.dot_dimension_numbers<[1], [0], [0], [1], [0, 0, 1, 1], [], []>} : vector<8x256xbf16>, vector<256x128xbf16>, vector<8x128xf32> -> vector<8x128xf32>
    %21 = vector.broadcast %3 : vector<1x128xf32> to vector<8x128xf32>
    %22 = arith.addf %20, %21 : vector<8x128xf32>
    %cst_15 = arith.constant 0.000000e+00 : f32
    %23 = vector.broadcast %cst_15 : f32 to vector<8x128xf32>
    %24 = arith.maximumf %22, %23 : vector<8x128xf32>
    %c0_16 = arith.constant 0 : index
    %c0_17 = arith.constant 0 : index
    %25 = vector.load %arg5[%c0_16, %c0_17] : memref<2x128xbf16, #tpu.memory_space<vmem>>, vector<2x128xbf16>
    %26 = arith.truncf %24 : vector<8x128xf32> to vector<8x128xbf16>
    %27 = tpu.transpose %26, [1, 0] : vector<8x128xbf16> -> vector<128x8xbf16>
    %cst_18 = arith.constant dense<0.000000e+00> : vector<2x8xf32>
    %28 = tpu.matmul %25, %27, %cst_18 {dimension_numbers = #tpu.dot_dimension_numbers<[1], [0], [0], [1], [0, 0, 1, 1], [], []>} : vector<2x128xbf16>, vector<128x8xbf16>, vector<2x8xf32> -> vector<2x8xf32>
    %c0_19 = arith.constant 0 : index
    %29 = memref.load %arg7[%c0_19] : memref<2xf32, #tpu.memory_space<smem>>
    %c1 = arith.constant 1 : index
    %30 = memref.load %arg7[%c1] : memref<2xf32, #tpu.memory_space<smem>>
    %31 = vector.broadcast %29 : f32 to vector<2x8xf32>
    %32 = arith.addf %28, %31 : vector<2x8xf32>
    %33 = math.tanh %32 : vector<2x8xf32>
    %34 = vector.broadcast %30 : f32 to vector<2x8xf32>
    %35 = arith.addf %28, %34 : vector<2x8xf32>
    %cst_20 = arith.constant 2.000000e+01 : f32
    %36 = vector.broadcast %cst_20 : f32 to vector<2x8xf32>
    %37 = arith.cmpf ogt, %35, %36 : vector<2x8xf32>
    %cst_21 = arith.constant 2.000000e+01 : f32
    %38 = vector.broadcast %cst_21 : f32 to vector<2x8xf32>
    %39 = arith.minimumf %35, %38 : vector<2x8xf32>
    %40 = math.exp %39 : vector<2x8xf32>
    %41 = math.log1p %40 : vector<2x8xf32>
    %42 = arith.select %37, %35, %41 : vector<2x8xi1>, vector<2x8xf32>
    %43 = tpu.iota {dimensions = array<i32: 0>} : vector<2x8xi32>
    %c0_i32 = arith.constant 0 : i32
    %44 = vector.broadcast %c0_i32 : i32 to vector<2x8xi32>
    %45 = arith.cmpi eq, %43, %44 : vector<2x8xi32>
    %46 = arith.select %45, %33, %42 : vector<2x8xi1>, vector<2x8xf32>
    %c0_22 = arith.constant 0 : index
    %c0_23 = arith.constant 0 : index
    %47 = vector.load %arg8[%c0_22, %c0_23] : memref<2x8xf32, #tpu.memory_space<vmem>>, vector<2x8xf32>
    tpu.vector_store %arg8[%c0_22, %c0_23], %46 {strides = array<i32>} : memref<2x8xf32, #tpu.memory_space<vmem>>, vector<2x8xf32>,
    return
  }
  func.func @transform_0(%arg0: i32) -> (i32, i32) {
    %c0_i32 = arith.constant 0 : i32
    %c0_i32_0 = arith.constant 0 : i32
    return %arg0, %c0_i32 : i32, i32
  }
  func.func @transform_1(%arg0: i32) -> (i32, i32) {
    %c0_i32 = arith.constant 0 : i32
    %c0_i32_0 = arith.constant 0 : i32
    %c0_i32_1 = arith.constant 0 : i32
    return %c0_i32, %c0_i32_0 : i32, i32
  }
  func.func @transform_2(%arg0: i32) -> (i32, i32) {
    %c0_i32 = arith.constant 0 : i32
    %c0_i32_0 = arith.constant 0 : i32
    %c0_i32_1 = arith.constant 0 : i32
    return %c0_i32, %c0_i32_0 : i32, i32
  }
  func.func @transform_3(%arg0: i32) -> (i32, i32) {
    %c0_i32 = arith.constant 0 : i32
    %c0_i32_0 = arith.constant 0 : i32
    %c0_i32_1 = arith.constant 0 : i32
    return %c0_i32, %c0_i32_0 : i32, i32
  }
  func.func @transform_4(%arg0: i32) -> (i32, i32) {
    %c0_i32 = arith.constant 0 : i32
    %c0_i32_0 = arith.constant 0 : i32
    %c0_i32_1 = arith.constant 0 : i32
    return %c0_i32, %c0_i32_0 : i32, i32
  }
  func.func @transform_5(%arg0: i32) -> (i32, i32) {
    %c0_i32 = arith.constant 0 : i32
    %c0_i32_0 = arith.constant 0 : i32
    %c0_i32_1 = arith.constant 0 : i32
    return %c0_i32, %c0_i32_0 : i32, i32
  }
  func.func @transform_6(%arg0: i32) -> i32 {
    %c0_i32 = arith.constant 0 : i32
    %c0_i32_0 = arith.constant 0 : i32
    return %c0_i32 : i32
  }
  func.func @transform_7(%arg0: i32) -> (i32, i32) {
    %c0_i32 = arith.constant 0 : i32
    %c0_i32_0 = arith.constant 0 : i32
    return %c0_i32, %arg0 : i32, i32
  }
}

</mosaic_0001>

<bundles_post_ra>
// kernel: actor_forward.1
= control target key start
LH: loop header
LB: loop body
LE: loop exit
PB: predicated region body
PF: predicated region fallthrough
CT: control target
= control target key end

     0   :  { %12 = vsyncpa [#allocation3], 0  ;;  %s1052_s0 = inlined_call_operand.hbm [shape: f32[8,16], index: 0, kind: input, shape index: {}]   ;;  %s1053_s1 = inlined_call_operand.hbm [shape: bf16[16,256], index: 1, kind: input, shape index: {}]   ;;  %s1054_s2 = inlined_call_operand.hbm [shape: bf16[256,256], index: 2, kind: input, shape index: {}]   ;;  %s1055_s3 = inlined_call_operand.hbm [shape: bf16[256,128], index: 3, kind: input, shape index: {}]   ;;  %s1056_s4 = inlined_call_operand.vmem [shape: bf16[2,128], index: 4, kind: input, shape index: {}]   ;;  %s1057_s5 = inlined_call_operand.hbm [shape: f32[1,640], index: 5, kind: input, shape index: {}]   ;;  %s1058_s6 = inlined_call_operand.hbm [shape: f32[2], index: 6, kind: input, shape index: {}]   ;;  %s1059_s7 = inlined_call_operand.vmem [shape: f32[2,8], index: 7, kind: output, shape index: {}]  }
   0x1   :  { %13 = vsyncpa [#allocation6], 0 }
   0x2   :  { %14 = vsyncpa [#allocation9], 0 }
   0x3   :  { %15 = vsyncpa [#allocation4], 0  ;;  %s964_s24 = smov [#allocation5]  }
   0x4   :  { %s31_s25 = sshll.u32 %s964_s24, 4  ;;  %s32_s25 = int_to_ptr.vmem [resolvable:$true] %s31_s25 }
   0x5   :  { %s856_s26 = scalar_lea.vmem %s32_s25, 256  ;;  %p861_p1 = scmp.lt.s32.totalorder %s32_s25, %s32_s25 }
   0x6   :  { %p857_p0 = scmp.ne.s32.totalorder %s32_s25, %s856_s26  ;;  %p862_p2 = scmp.lt.s32.totalorder %s856_s26, %s856_s26 }
   0x8   :  { %p863_p3 = por %p862_p2, %p861_p1 }
   0xa   :  { %p864_p4 = pnand %p863_p3, %p857_p0 }
   0xc   :  { %867 = shalt.err (!%p864_p4)
}
   0xd   :  { %s965_s27 = smov 128   ;;  %s966_s28 = smov 8  }
   0xe   :  { %37 = dma.hbm_to_vmem [thread:$0]  %s1053_s1, 256, %s32_s25, [#allocation6], %s965_s27, %s965_s27, %s966_s28  }
   0xf   :  { %s967_s8 = smov [#allocation8]  }
  0x10   :  { %s55_s9 = sshll.u32 %s967_s8, 4  ;;  %s56_s9 = int_to_ptr.vmem [resolvable:$true] %s55_s9 }
  0x11   :  { %s876_s10 = scalar_lea.vmem %s56_s9, 2048  ;;  %p881_p6 = scmp.lt.s32.totalorder %s56_s9, %s56_s9 }
  0x12   :  { %p877_p5 = scmp.ne.s32.totalorder %s56_s9, %s876_s10  ;;  %p882_p7 = scmp.lt.s32.totalorder %s876_s10, %s876_s10 }
  0x14   :  { %p883_p8 = por %p882_p7, %p881_p6 }
  0x16   :  { %p884_p9 = pnand %p883_p8, %p877_p5 }
  0x18   :  { %887 = shalt.err (!%p884_p9)
}
  0x19   :  { %s968_s11 = smov 64   ;;  %s969_s12 = smov 4  }
  0x1a   :  { %61 = dma.hbm_to_vmem [thread:$0]  %s1055_s3, 2048, %s56_s9, [#allocation9], %s968_s11, %s968_s11, %s969_s12  }
  0x1b   :  { %s970_s15 = smov [#allocation2]   ;;  %s971_s17 = smov [#allocation7]  }
  0x1c   :  { %s22_s16 = sshll.u32 %s970_s15, 4  ;;  %s43_s1 = sshll.u32 %s971_s17, 4  ;;  %s23_s16 = int_to_ptr.vmem [resolvable:$true] %s22_s16  ;;  %s44_s1 = int_to_ptr.vmem [resolvable:$true] %s43_s1 }
  0x1d   :  { %s896_s18 = scalar_lea.vmem %s23_s16, 128  ;;  %p901_p11 = scmp.lt.s32.totalorder %s23_s16, %s23_s16 }
  0x1e   :  { %p897_p10 = scmp.ne.s32.totalorder %s23_s16, %s896_s18  ;;  %p902_p12 = scmp.lt.s32.totalorder %s896_s18, %s896_s18 }
  0x20   :  { %p903_p13 = por %p902_p12, %p901_p11 }
  0x22   :  { %p904_p0 = pnand %p903_p13, %p897_p10 }
  0x24   :  { %907 = shalt.err (!%p904_p0)
}
  0x25   :  { %25 = dma.hbm_to_vmem [thread:$0]  %s1052_s0, 128, %s23_s16, [#allocation3]  }
  0x26   :  { %s916_s21 = scalar_lea.vmem %s44_s1, 4096  ;;  %p921_p2 = scmp.lt.s32.totalorder %s44_s1, %s44_s1 }
  0x27   :  { %p917_p1 = scmp.ne.s32.totalorder %s44_s1, %s916_s21  ;;  %p922_p3 = scmp.lt.s32.totalorder %s916_s21, %s916_s21 }
  0x29   :  { %p923_p4 = por %p922_p3, %p921_p2 }
  0x2b   :  { %p924_p5 = pnand %p923_p4, %p917_p1 }
  0x2d   :  { %927 = shalt.err (!%p924_p5)
}
  0x2e   :  { %49 = dma.hbm_to_vmem [thread:$0]  %s1054_s2, 4096, %s44_s1, [#allocation6], %s965_s27, %s965_s27, %s966_s28  }
  0x2f   :  { %s972_s23 = smov [#allocation10]  }
  0x30   :  { %s70_s24 = sshll.u32 %s972_s23, 4  ;;  %s71_s24 = int_to_ptr.vmem [resolvable:$true] %s70_s24 }
  0x31   :  { %s936_s25 = scalar_lea.vmem %s71_s24, 80  ;;  %s940_s0 = scalar_lea.vmem %s71_s24, 96 }
  0x32   :  { %p937_p6 = scmp.ne.s32.totalorder %s71_s24, %s936_s25  ;;  %p941_p7 = scmp.lt.s32.totalorder %s71_s24, %s71_s24 }
  0x33   :  { %p942_p8 = scmp.lt.s32.totalorder %s940_s0, %s936_s25 }
  0x35   :  { %p943_p9 = por %p942_p8, %p941_p7 }
  0x37   :  { %p944_p10 = pnand %p943_p9, %p937_p6 }
  0x39   :  { %947 = shalt.err (!%p944_p10)
}
  0x3a   :  { %73 = dma.hbm_to_vmem [thread:$0]  %s1057_s5, 80, %s71_s24, [#allocation9]  }
  0x3b   :  { %s973_s30 = smov [#allocation11]  }
  0x3c   :  { %81 = dma.hbm_to_smem %s1058_s6, 16, %s973_s30, [#allocation4]  }
  0x3d   :  { %956 = dma.done.wait [#allocation3], 128  }
  0x3e   :  { %957 = vsyncadd [#allocation3], 4294967168 }
  0x3f   :  { %958 = dma.done.wait [#allocation6], 4352  }
  0x40   :  { %959 = vsyncadd [#allocation6], 4294962944 }
  0x41   :  { %960 = dma.done.wait [#allocation9], 2128  }
  0x42   :  { %961 = vsyncadd [#allocation9], 4294965168 }
  0x43   :  { %962 = dma.done.wait [#allocation4], 16  }
  0x44   :  { %963 = vsyncadd [#allocation4], 4294967280 }
  0x45   :  { %100 = sfence }
  0x46   :  { %v775_v0 = vld [vmem:[#allocation5 + $0x4] ss:$8 sps:$4 sm:$0xff]   ;;  %v777_v1 = vld [vmem:[#allocation5] ss:$8 sps:$4 sm:$0xff]   ;;  %v974_v2 = vmov 0   ;;  %v102_v3 = vld [vmem:[#allocation2] sm:$0xff]  ;;  %v110_v49 = vlaneseq }
  0x47   :  { %166 = vmatprep.mubr.bf16.mxu0 %v974_v2  ;;  %148 = vmatprep.subr.bf16.mxu0 %v775_v0  ;;  %v106_v4 = vpack.c.bf16 %v102_v3, %v102_v3  ;;  %v778_v5 = vld [vmem:[#allocation7 + $0x74] ss:$8 sps:$4 sm:$0xff]   ;;  %v780_v6 = vld [vmem:[#allocation7 + $0x70] ss:$8 sps:$4 sm:$0xff]   ;;  %vm130_vm0 = vcmask 130048   ;;  %v830_v41 = vld [vmem:[#allocation8 + $0x68] sm:$0xff]  }
  0x48   :  { %149 = vmatpush1.bf16.msra.mxu0 %v777_v1  ;;  %v781_v7 = vld [vmem:[#allocation7 + $0x64] ss:$8 sps:$4 sm:$0xff]   ;;  %382 = vmatprep.subr.bf16.mxu1 %v778_v5  ;;  %v783_v8 = vld [vmem:[#allocation7 + $0x60] ss:$8 sps:$4 sm:$0xff]   ;;  %v784_v9 = vld [vmem:[#allocation7 + $0x54] ss:$8 sps:$4 sm:$0xff]  }
  0x49   :  { %383 = vmatpush1.bf16.msra.mxu1 %v780_v6  ;;  %v786_v10 = vld [vmem:[#allocation7 + $0x50] ss:$8 sps:$4 sm:$0xff]   ;;  %v787_v11 = vld [vmem:[#allocation7 + $0x44] ss:$8 sps:$4 sm:$0xff]   ;;  %v789_v12 = vld [vmem:[#allocation7 + $0x40] ss:$8 sps:$4 sm:$0xff]  }
  0x4a   :  { %384 = vmatprep.subr.bf16.mxu1 %v781_v7  ;;  %v790_v13 = vld [vmem:[#allocation7 + $0x34] ss:$8 sps:$4 sm:$0xff]   ;;  %v792_v14 = vld [vmem:[#allocation7 + $0x30] ss:$8 sps:$4 sm:$0xff]   ;;  %v793_v15 = vld [vmem:[#allocation7 + $0x24] ss:$8 sps:$4 sm:$0xff]  }
  0x4b   :  { %681 = vmatmul.mubr.msk.bf16.vlgmr.msra.gmra.mxu0 %vm130_vm0, %v106_v4  ;;  %v795_v16 = vld [vmem:[#allocation7 + $0x20] ss:$8 sps:$4 sm:$0xff]   ;;  %v796_v17 = vld [vmem:[#allocation7 + $0x14] ss:$8 sps:$4 sm:$0xff]   ;;  %v798_v18 = vld [vmem:[#allocation7 + $0x10] ss:$8 sps:$4 sm:$0xff]  }
  0x4c   :  { %v799_v19 = vld [vmem:[#allocation7 + $0x4] ss:$8 sps:$4 sm:$0xff]   ;;  %v801_v20 = vld [vmem:[#allocation7] ss:$8 sps:$4 sm:$0xff]   ;;  %v802_v21 = vld [vmem:[#allocation7 + $0xf4] ss:$8 sps:$4 sm:$0xff]  }
  0x4d   :  { %385 = vmatpush1.bf16.msra.mxu1 %v783_v8  ;;  %v804_v22 = vld [vmem:[#allocation7 + $0xf0] ss:$8 sps:$4 sm:$0xff]   ;;  %v805_v23 = vld [vmem:[#allocation7 + $0xe4] ss:$8 sps:$4 sm:$0xff]   ;;  %v807_v24 = vld [vmem:[#allocation7 + $0xe0] ss:$8 sps:$4 sm:$0xff]  }
  0x4e   :  { %386 = vmatprep.subr.bf16.mxu1 %v784_v9  ;;  %v808_v25 = vld [vmem:[#allocation7 + $0xd4] ss:$8 sps:$4 sm:$0xff]   ;;  %v810_v26 = vld [vmem:[#allocation7 + $0xd0] ss:$8 sps:$4 sm:$0xff]   ;;  %v811_v27 = vld [vmem:[#allocation7 + $0xc4] ss:$8 sps:$4 sm:$0xff]  }
  0x4f   :  { %v813_v28 = vld [vmem:[#allocation7 + $0xc0] ss:$8 sps:$4 sm:$0xff]   ;;  %v814_v29 = vld [vmem:[#allocation7 + $0xb4] ss:$8 sps:$4 sm:$0xff]   ;;  %v816_v30 = vld [vmem:[#allocation7 + $0xb0] ss:$8 sps:$4 sm:$0xff]  }
  0x50   :  { %v817_v31 = vld [vmem:[#allocation7 + $0xa4] ss:$8 sps:$4 sm:$0xff]   ;;  %v819_v32 = vld [vmem:[#allocation7 + $0xa0] ss:$8 sps:$4 sm:$0xff]   ;;  %v820_v33 = vld [vmem:[#allocation7 + $0x94] ss:$8 sps:$4 sm:$0xff]  }
  0x51   :  { %387 = vmatpush1.bf16.msra.mxu1 %v786_v10  ;;  %v822_v34 = vld [vmem:[#allocation7 + $0x90] ss:$8 sps:$4 sm:$0xff]   ;;  %v823_v35 = vld [vmem:[#allocation7 + $0x84] ss:$8 sps:$4 sm:$0xff]   ;;  %v825_v36 = vld [vmem:[#allocation7 + $0x80] ss:$8 sps:$4 sm:$0xff]  }
  0x52   :  { %388 = vmatprep.subr.bf16.mxu1 %v787_v11  ;;  %v826_v37 = vld [vmem:[#allocation8 + $0x78] sm:$0xff]   ;;  %v828_v39 = vld [vmem:[#allocation8 + $0x70] sm:$0xff]   ;;  %v831_v42 = vld [vmem:[#allocation8 + $0x28] sm:$0xff]   ;;  %v1041_v50 = vshrl.u32 %v110_v49, 7  ;;  %vm976_vm1 = vmmov 0   ;;  %s731_s6 = sld [smem:[#allocation11 + $0x1]] }
  0x53   :  { %v827_v38 = vld [vmem:[#allocation8 + $0x38] sm:$0xff]   ;;  %732 = vmatprep.subr.bf16.mxu0 %v826_v37  ;;  %v829_v40 = vld [vmem:[#allocation8 + $0x30] sm:$0xff]   ;;  %v832_v43 = vld [vmem:[#allocation8 + $0x60] sm:$0xff]   ;;  %s644_s27 = sld [smem:[#allocation11]]  ;;  %vm669_vm5 = vcmask 58368  }
  0x54   :  { %733 = vmatpush3.bf16.msra.mxu0 %v827_v38  ;;  %v833_v44 = vld [vmem:[#allocation8 + $0x20] sm:$0xff]   ;;  %v834_v45 = vld [vmem:[#allocation8 + $0x58] sm:$0xff]   ;;  %v836_v47 = vld [vmem:[#allocation8 + $0x50] sm:$0xff]   ;;  %v112_v51 = vsub.s32 0, %v1041_v50  ;;  %v116_v53 = vsub.s32 1, %v1041_v50  ;;  %vm667_vm3 = vcmp.eq.s32.totalorder %v1041_v50, 0 }
  0x55   :  { %389 = vmatpush1.bf16.msra.mxu1 %v789_v12  ;;  %734 = vmatprep.subr.bf16.mxu0 %v828_v39  ;;  %v835_v46 = vld [vmem:[#allocation8 + $0x18] sm:$0xff]   ;;  %v837_v48 = vld [vmem:[#allocation8 + $0x10] sm:$0xff]   ;;  %v103_v52 = vld [vmem:[#allocation10] sm:$0x3] }
  0x56   :  { %390 = vmatprep.subr.bf16.mxu1 %v790_v13  ;;  %v113_v54 = vrot.slane %v103_v52, %v112_v51  ;;  %v117_v55 = vrot.slane %v103_v52, %v116_v53  ;;  %v838_v2 = vld [vmem:[#allocation8 + $0x48] sm:$0xff]   ;;  %v840_v4 = vld [vmem:[#allocation8 + $0x40] sm:$0xff]  }
  0x57   :  { %v839_v3 = vld [vmem:[#allocation8 + $0x8] sm:$0xff]   ;;  %v841_v5 = vld [vmem:[#allocation8] sm:$0xff]  }
  0x58   :  { %735 = vmatpush3.bf16.msra.mxu0 %v829_v40  ;;  %v104_v6 = vld [vmem:[#allocation10 + $0x2] sm:$0x3] }
  0x59   :  { %391 = vmatpush1.bf16.msra.mxu1 %v792_v14  ;;  %736 = vmatprep.subr.bf16.mxu0 %v830_v41  ;;  %v215_v7 = vrot.slane %v104_v6, %v112_v51  ;;  %v219_v8 = vrot.slane %v104_v6, %v116_v53  ;;  %v646_v39 = vstv %s644_s27 }
  0x5a   :  { %392 = vmatprep.subr.bf16.mxu1 %v793_v15 }
  0x5c   :  { %737 = vmatpush3.bf16.msra.mxu0 %v831_v42 }
  0x5d   :  { %393 = vmatpush1.bf16.msra.mxu1 %v795_v16  ;;  %738 = vmatprep.subr.bf16.mxu0 %v832_v43 }
  0x5e   :  { %394 = vmatprep.subr.bf16.mxu1 %v796_v17 }
  0x60   :  { %739 = vmatpush3.bf16.msra.mxu0 %v833_v44 }
  0x61   :  { %395 = vmatpush1.bf16.msra.mxu1 %v798_v18  ;;  %740 = vmatprep.subr.bf16.mxu0 %v834_v45 }
  0x62   :  { %396 = vmatprep.subr.bf16.mxu1 %v799_v19  ;;  %v975_v19 = vmov 0.0  }
  0x64   :  { %741 = vmatpush3.bf16.msra.mxu0 %v835_v46 }
  0x65   :  { %397 = vmatpush1.bf16.msra.mxu1 %v801_v20  ;;  %742 = vmatprep.subr.bf16.mxu0 %v836_v47 }
  0x66   :  { %398 = vmatprep.subr.bf16.mxu1 %v802_v21  ;;  %v714_v21 = vld [vmem:[#allocation10 + $0x4] ss:$0 sm:$0xff] }
  0x68   :  { %743 = vmatpush3.bf16.msra.mxu0 %v837_v48 }
  0x69   :  { %399 = vmatpush2.bf16.msra.mxu1 %v804_v22  ;;  %744 = vmatprep.subr.bf16.mxu0 %v838_v2 }
  0x6a   :  { %400 = vmatprep.subr.bf16.mxu1 %v805_v23 }
  0x6c   :  { %745 = vmatpush3.bf16.msra.mxu0 %v839_v3 }
  0x6d   :  { %401 = vmatpush2.bf16.msra.mxu1 %v807_v24  ;;  %746 = vmatprep.subr.bf16.mxu0 %v840_v4 }
  0x6e   :  { %402 = vmatprep.subr.bf16.mxu1 %v808_v25 }
  0x70   :  { %747 = vmatpush3.bf16.msra.mxu0 %v841_v5 }
  0x71   :  { %403 = vmatpush2.bf16.msra.mxu1 %v810_v26  ;;  %756 = vmatprep.subr.bf16.mxu0 %v975_v19 }
  0x72   :  { %404 = vmatprep.subr.bf16.mxu1 %v811_v27 }
  0x75   :  { %405 = vmatpush2.bf16.msra.mxu1 %v813_v28 }
  0x76   :  { %406 = vmatprep.subr.bf16.mxu1 %v814_v29  ;;  %v602_v29 = vld [vmem:[%s1056_s4] sm:$0x1] }
  0x79   :  { %407 = vmatpush2.bf16.msra.mxu1 %v816_v30  ;;  %v649_v30 = vstv %s731_s6 }
  0x7a   :  { %408 = vmatprep.subr.bf16.mxu1 %v817_v31 }
  0x7d   :  { %409 = vmatpush2.bf16.msra.mxu1 %v819_v32 }
  0x7e   :  { %410 = vmatprep.subr.bf16.mxu1 %v820_v33 }
  0x81   :  { %411 = vmatpush2.bf16.msra.mxu1 %v822_v34 }
  0x82   :  { %412 = vmatprep.subr.bf16.mxu1 %v823_v35 }
  0x85   :  { %413 = vmatpush2.bf16.msra.mxu1 %v825_v36 }
 0x10b   :  { %v168_v56 = vpop.f32.mrf.mxu0 }
 0x10c   :  { %v169_v57 = vadd.f32 %v168_v56, %v113_v54 }
 0x10d   :  { %v170_v58 = vpop.f32.mrf.mxu0 }
 0x10e   :  { %v171_v59 = vadd.f32 %v170_v58, %v117_v55  ;;  %v175_v60 = vmax.f32 %v169_v57, 0.0 }
 0x10f   :  { %v172_v61 = vpop.f32.mrf.mxu0 }
 0x110   :  { %v176_v62 = vmax.f32 %v171_v59, 0.0  ;;  %v177_v1 = vpack.c.bf16 %v175_v60, %v175_v60 }
 0x111   :  { %v173_v63 = vpop.f32.mrf.mxu0 }
 0x112   :  { %v178_v0 = vpack.c.bf16 %v176_v62, %v176_v62 }
 0x114   :  { %414 = vmatprep.mubr.bf16.mxu1 %v178_v0 }
 0x115   :  { %415 = vmatmul.mubr.bf16.vlgmr.msra.gmra.mxu1 %v177_v1 }
 0x1d5   :  { %v416_v9 = vpop.f32.mrf.mxu1 }
 0x1d6   :  { %v417_v10 = vadd.f32 %v416_v9, %v215_v7 }
 0x1d7   :  { %v418_v11 = vpop.f32.mrf.mxu1 }
 0x1d8   :  { %v419_v12 = vadd.f32 %v418_v11, %v219_v8  ;;  %v423_v13 = vmax.f32 %v417_v10, 0.0 }
 0x1d9   :  { %v420_v14 = vpop.f32.mrf.mxu1 }
 0x1da   :  { %v424_v15 = vmax.f32 %v419_v12, 0.0  ;;  %v425_v18 = vpack.c.bf16 %v423_v13, %v423_v13 }
 0x1db   :  { %v421_v16 = vpop.f32.mrf.mxu1 }
 0x1dc   :  { %v426_v17 = vpack.c.bf16 %v424_v15, %v424_v15 }
 0x1de   :  { %593 = vmatprep.mubr.bf16.mxu0 %v426_v17 }
 0x1df   :  { %594 = vmatmul.mubr.bf16.vlgmr.msra.gmra.mxu0 %v425_v18 }
 0x1e0   :  { %758 = vmatprep.mubr.msk.bf16.mxu0 %vm976_vm1, %v975_v19 }
 0x29f   :  { %v748_v20 = vpop.f32.mrf.mxu0 }
 0x2a1   :  { %v749_v22 = vpop.f32.mrf.mxu0 }
 0x2a2   :  { %v750_v23 = vadd.f32 %v749_v22, %v748_v20 }
 0x2a3   :  { %v751_v24 = vpop.f32.mrf.mxu0 }
 0x2a4   :  { %v596_v25 = vadd.f32 %v750_v23, %v714_v21 }
 0x2a5   :  { %v752_v26 = vpop.f32.mrf.mxu0 }
 0x2a6   :  { %v601_v27 = vmax.f32 %v596_v25, 0.0 }
 0x2a8   :  { %v603_v28 = vpack.c.bf16 %v601_v27, %v601_v27 }
 0x2aa   :  { %757 = vmatpush3.bf16.xpose.msra.mxu0 %v603_v28 }
 0x2b1   :  { %759 = vmatmul.mubr.bf16.vlgmr.msra.gmra.mxu0 %v602_v29 }
 0x371   :  { %v638_v31 = vpop.f32.mrf.mxu0 }
 0x372   :  { %v650_v32 = vadd.f32 %v649_v30, %v638_v31  ;;  %v647_v41 = vadd.f32 %v646_v39, %v638_v31 }
 0x373   :  { %v760_v33 = vpop.f32.mrf.mxu0 }
 0x374   :  { %v652_v34 = vmin.f32 %v650_v32, 20.0  ;;  %vm651_vm4 = vcmp.gt.f32.partialorder %v650_v32, 20.0 }
 0x375   :  { %v641_v35 = vpop.f32.mrf.mxu0 }
 0x376   :  { %v653_v36 = vmul.f32 1.442695, %v652_v34 }
 0x377   :  { %v761_v37 = vpop.f32.mrf.mxu0 }
 0x378   :  { %842 = vpow2.f32 %v653_v36 }
 0x385   :  { %v843_v38 = vpop.eup %842 }
 0x386   :  { %v655_v40 = vadd.f32 1.0, %v843_v38  ;;  %v658_v42 = vmul.f32 -0.5, %v843_v38  ;;  %v661_v44 = vand.u32 2147483647, %v843_v38 }
 0x388   :  { %844 = vlog2.f32 %v655_v40  ;;  %v659_v43 = vadd.f32 1.0, %v658_v42  ;;  %vm662_vm2 = vcmp.lt.f32.partialorder %v661_v44, 0.0004427343 }
 0x389   :  { %846 = vtanh.f32 %v647_v41 }
 0x38a   :  { %v660_v47 = vmul.f32 %v843_v38, %v659_v43 }
 0x395   :  { %v845_v45 = vpop.eup %844 }
 0x396   :  { %v657_v46 = vmul.f32 0.6931472, %v845_v45  ;;  %v847_v49 = vpop.eup %846 }
 0x398   :  { %v663_v48 = vsel %vm662_vm2, %v660_v47, %v657_v46 }
 0x399   :  { %v664_v51 = vsel %vm651_vm4, %v650_v32, %v663_v48 }
 0x39a   :  { %v668_v52 = vsel %vm667_vm3, %v847_v49, %v664_v51 }
 0x39b   :  { %670 = vst.msk [vmem:[%s1059_s7] sm:$0x3] %vm669_vm5, %v668_v52 }
 0x39c   :  { %675 = vsyncpa [#allocation3], 1 }
 0x39d   :  { %676 = vsyncpa [#allocation6], 1 }
 0x39e   :  { %677 = vsyncpa [#allocation9], 1 }
 0x39f   :  { %678 = vsyncpa [#allocation4], 1 }

</bundles_post_ra>
